<compile_context>
chip_gen: v6e
topology: v6e:2x2x1
jax: 0.10.0
libtpu: 0.0.40
codegen_flags: <defaults>
</compile_context>

<pallas_src>
import math

import jax
import jax.numpy as jnp
from jax.experimental import pallas as pl
from jax.experimental.pallas import tpu as pltpu


# ---------------------------------------------------------------------------
# Kernel bodies
# ---------------------------------------------------------------------------

def _drop_kernel_dense(x_ref, o_ref):
    # x_ref: (blk, F) dense block -- the dropped frames were never DMA'd.
    o_ref[...] = x_ref[...]


def _drop_kernel_padded(x_ref, o_ref):
    # Fallback layout: x_ref is (blk, 1, 1, F); only phase 0 was DMA'd.
    o_ref[...] = x_ref[:, 0, 0, :]


# ---------------------------------------------------------------------------
# Block sizing
# ---------------------------------------------------------------------------

def _pick_block_rows(n_rows: int, feat: int, dtype, squeezed_input: bool) -> int:
    """Rows (batch x kept-frame) per block.

    Dtype-aware (sublane tile 8/16/32 for 4/2/1-byte dtypes), accounts for the
    double-buffered input AND output blocks, targets ~8 MiB of live blocks per
    step, keeps >=2 grid steps when possible, and prefers a tail-free blk.
    """
    itemsize = jnp.dtype(dtype).itemsize
    sublane = max(8, 32 // itemsize)            # 8 f32 / 16 bf16 / 32 int8
    f_pad = pl.cdiv(feat, 128) * 128            # lane padding of the last dim
    # Input row cost: dense (blk, F) if squeezed, else one (8,128)-padded
    # sublane slab per row in the (blk, 1, 1, F) fallback layout.
    in_row = f_pad * itemsize * (1 if squeezed_input else sublane)
    out_row = f_pad * itemsize
    row_bytes = in_row + out_row

    # Tiny problem: single full block.
    if n_rows <= 2 * sublane:
        return n_rows

    # ~8 MiB of live (input+output) blocks per step; x2 double buffering
    # => ~16 MiB pipeline footprint (safe on v5e/v6e/v7x, see module docstring).
    budget = 8 * 1024 * 1024
    cap = max(sublane, (budget // row_bytes) // sublane * sublane)
    # Keep >= 2 grid steps so the "parallel" axis can use both v7x TensorCores.
    cap = min(cap, max(sublane, pl.cdiv(pl.cdiv(n_rows, 2), sublane) * sublane))

    # Prefer a block size that divides n_rows (no ragged masked tail).
    lo = max(sublane, cap // 2)
    for cand in range(cap, lo - 1, -sublane):
        if cand > 0 and n_rows % cand == 0:
            return cand
    return cap


# ---------------------------------------------------------------------------
# pallas_call builder
# ---------------------------------------------------------------------------

def _drop_pallas(xs_padded, B, t_out, F, factor, squeezed):
    """xs_padded: [B, t_out*factor, F]; returns [B, t_out, F]."""
    rows = B * t_out
    dtype = xs_padded.dtype
    blk = _pick_block_rows(rows, F, dtype, squeezed)
    grid = (pl.cdiv(rows, blk),)
    itemsize = jnp.dtype(dtype).itemsize

    if squeezed:
        # One row per kept frame, factor phases per row; the BlockSpec squeezes
        # the phase axis so the VMEM block is a dense (blk, F) buffer and only
        # phase 0 is ever read from HBM.
        x_view = xs_padded.reshape(rows, factor, F)
        kernel = _drop_kernel_dense
        in_specs = [pl.BlockSpec((blk, None, F), lambda i: (i, 0, 0))]
    else:
        # Proven fallback layout (pays a sublane-pad tax in VMEM only).
        x_view = xs_padded.reshape(rows, factor, 1, F)
        kernel = _drop_kernel_padded
        in_specs = [pl.BlockSpec((blk, 1, 1, F), lambda i: (i, 0, 0, 0))]

    out = pl.pallas_call(
        kernel,
        out_shape=jax.ShapeDtypeStruct((rows, F), dtype),
        grid=grid,
        in_specs=in_specs,
        out_specs=pl.BlockSpec((blk, F), lambda i: (i, 0)),
        compiler_params=pltpu.CompilerParams(
            dimension_semantics=("parallel",),      # v7x: shard across both TCs
            vmem_limit_bytes=32 * 1024 * 1024,      # >= v5e's 16 MiB default
        ),
        cost_estimate=pl.CostEstimate(
            flops=0, transcendentals=0,
            bytes_accessed=2 * rows * F * itemsize),   # pure mem-bound copy
    )(x_view)
    return out.reshape(B, t_out, F)


# One-time probe: can Mosaic squeeze the (second-minor) phase axis out of the
# input block?  Checks lowering AND numerics; otherwise use the fallback.
_SQUEEZED_SPEC_OK = None


def _squeezed_spec_supported() -> bool:
    global _SQUEEZED_SPEC_OK
    if _SQUEEZED_SPEC_OK is None:
        try:
            Bp, Tp, Fp, fac = 2, 48, 80, 3        # multi-block, non-128 lane dim
            x = jnp.arange(Bp * Tp * Fp, dtype=jnp.float32).reshape(Bp, Tp, Fp)
            got = _drop_pallas(x, Bp, Tp // fac, Fp, fac, squeezed=True)
            jax.block_until_ready(got)
            _SQUEEZED_SPEC_OK = bool(jnp.array_equal(got, x[:, ::fac, :]))
        except Exception:
            _SQUEEZED_SPEC_OK = False
    return _SQUEEZED_SPEC_OK


# ---------------------------------------------------------------------------
# Public forward
# ---------------------------------------------------------------------------

def drop_subsample(xs, xlens, subsampling_factor: int):
    """Pallas implementation of DropSubsampler.forward.

    Args:
        xs:    float array [B, T, F]
        xlens: int array [B]
        subsampling_factor: int
    Returns:
        (xs_sub [B, T', F], xlens_sub [B]) with T' = ceil(T / factor).
    """
    xlens = jnp.asarray(xlens).astype(jnp.int32)
    factor = int(subsampling_factor)
    if factor == 1:
        return xs, xlens

    B, T, F = xs.shape
    t_out = -(-T // factor)  # ceil(T / factor)

    # Length update in plain JAX (trivial scalar math, no SMEM plumbing).
    xlens_sub = jnp.maximum(jnp.int32(1), (xlens + (factor - 1)) // factor)

    # Make T divisible by factor so the grouped view is a free reshape.
    t_pad = t_out * factor
    if t_pad != T:
        # TODO(synk): this pad reads+writes the full un-subsampled tensor; a
        # manual strided-DMA variant (memory_space=pl.ANY + make_async_copy
        # over pl.ds(..., stride=factor)) would avoid it.  Real ASR front ends
        # usually feed T % factor == 0, which takes the zero-copy path below.
        xs = jnp.pad(xs, ((0, 0), (0, t_pad - T), (0, 0)))

    xs_sub = _drop_pallas(xs, B, t_out, F, factor,
                          squeezed=_squeezed_spec_supported())
    return xs_sub, xlens_sub


# ---------------------------------------------------------------------------
# Self-test
# ---------------------------------------------------------------------------

def _check(xs, xlens, factor):
    xs_sub, xlens_sub = drop_subsample(xs, xlens, factor)
    jax.block_until_ready(xs_sub)
    jax.block_until_ready(xlens_sub)
    # Reference (mirrors the PyTorch forward).
    xs_ref = xs[:, ::factor, :]
    xlens_ref = jnp.array(
        [max(1, math.ceil(int(l) / factor)) for l in xlens], dtype=jnp.int32
    )
    assert xs_sub.shape == xs_ref.shape, (xs_sub.shape, xs_ref.shape)
    assert jnp.array_equal(xs_sub, xs_ref), "frame-drop mismatch"
    assert jnp.array_equal(xlens_sub, xlens_ref), (xlens_sub, xlens_ref)


if __name__ == "__main__":
    key = jax.random.PRNGKey(0)
    k1, k2, k3 = jax.random.split(key, 3)
    factor = 3

    # Case 1: lane-dense features (F=128), T divisible by factor (zero-copy path).
    xs1 = jax.random.normal(k1, (2, 48, 128), dtype=jnp.float32)
    xlens1 = jnp.array([48, 17], dtype=jnp.int32)
    _check(xs1, xlens1, factor)

    # Case 2: ASR-like F=80, T not divisible by factor (padded path).
    xs2 = jax.random.normal(k2, (2, 16, 80), dtype=jnp.float32)
    xlens2 = jnp.array([16, 7], dtype=jnp.int32)
    _check(xs2, xlens2, factor)

    # Case 3: bf16 input (exercises dtype-aware sublane/block sizing).
    xs3 = jax.random.normal(k3, (2, 24, 80), dtype=jnp.bfloat16)
    xlens3 = jnp.array([24, 10], dtype=jnp.int32)
    _check(xs3, xlens3, factor)

    print("KERNEL_OK")
</pallas_src>

<mosaic_0001>
module attributes {stable_mosaic.version = 11 : i64} {
  func.func @_drop_kernel_padded(%arg0: i32, %arg1: memref<16x1x1x128xf32, #tpu.memory_space<vmem>>, %arg2: memref<16x128xf32, #tpu.memory_space<vmem>>) attributes {dimension_semantics = [#tpu.dimension_semantics<parallel>], iteration_bounds = array<i64: 2>, scalar_prefetch = 0 : i64, scratch_operands = 0 : i64, tpu.core_type = #tpu.core_type<tc>, window_params = [{transform_indices = @transform_0, window_bounds = array<i64: 16, 1, 1, 128>}, {transform_indices = @transform_1, window_bounds = array<i64: 16, 128>}]} {
    %c0 = arith.constant 0 : index
    %c0_0 = arith.constant 0 : index
    %c0_1 = arith.constant 0 : index
    %c0_2 = arith.constant 0 : index
    %0 = vector.load %arg1[%c0, %c0_0, %c0_1, %c0_2] : memref<16x1x1x128xf32, #tpu.memory_space<vmem>>, vector<16x1x1x128xf32>
    %1 = vector.shape_cast %0 : vector<16x1x1x128xf32> to vector<16x128xf32>
    %c0_3 = arith.constant 0 : index
    %c0_4 = arith.constant 0 : index
    %2 = vector.load %arg2[%c0_3, %c0_4] : memref<16x128xf32, #tpu.memory_space<vmem>>, vector<16x128xf32>
    tpu.vector_store %arg2[%c0_3, %c0_4], %1 {strides = array<i32>} : memref<16x128xf32, #tpu.memory_space<vmem>>, vector<16x128xf32>,
    return
  }
  func.func @transform_0(%arg0: i32) -> (i32, i32, i32, i32) {
    %c0_i32 = arith.constant 0 : i32
    %c0_i32_0 = arith.constant 0 : i32
    %c0_i32_1 = arith.constant 0 : i32
    %c0_i32_2 = arith.constant 0 : i32
    return %arg0, %c0_i32, %c0_i32_0, %c0_i32_1 : i32, i32, i32, i32
  }
  func.func @transform_1(%arg0: i32) -> (i32, i32) {
    %c0_i32 = arith.constant 0 : i32
    %c0_i32_0 = arith.constant 0 : i32
    return %arg0, %c0_i32 : i32, i32
  }
}

</mosaic_0001>

<bundles_post_ra>
// kernel: tpu_custom_call.1
= control target key start
LH: loop header
LB: loop body
LE: loop exit
PB: predicated region body
PF: predicated region fallthrough
CT: control target
= control target key end

     0   :  { %6 = vsyncpa [#allocation3], 0  ;;  %s718_s0 = inlined_call_operand.hbm [shape: f32[32,3,1,128], index: 0, kind: input, shape index: {}]   ;;  %s719_s1 = inlined_call_operand.hbm [shape: f32[32,128], index: 1, kind: output, shape index: {}]  }
   0x1   :  { %8 = vsyncpa [#allocation3 + $0x1], 0 }
   0x2   :  { %9 = vsyncpa [#allocation4], 0 }
   0x3   :  { %11 = vsyncpa [#allocation4 + $0x1], 0  ;;  %s540_s6 = smov 0   ;;  %s542_s7 = smov 0  }
   0x4   :  { %s544_s8 = smov 0   ;;  %s546_s9 = smov 0  }
   0x5 LB: > { %s561_s10 = sadd.s32 4294967295, %s520_s9   ;;  %s359_s11 = sadd.s32 4294967294, %s520_s9   ;;  %s520_s9 = sphi %s546_s9, %s735_s9   ;;  %s516_s8 = sphi %s544_s8, %s734_s8   ;;  %s512_s7 = sphi %s542_s7, %s733_s7   ;;  %s508_s6 = sphi %s540_s6, %s732_s6  }
   0x6   : > { %s565_s12 = sadd.s32 1, %s520_s9   ;;  %s24_s13 = sadd.s32 1, %s516_s8 }
   0x7   : > { %s21_s14 = ssub.s32 %s520_s9, %s565_s12  ;;  %p31_p0 = scmp.ne.s32.totalorder %s516_s8, %s512_s7 }
   0x8   : > { %p22_p1 = scmp.eq.s32.totalorder %s21_s14, 0  ;;  %p32_p2 = scmp.eq.s32.totalorder %s520_s9, 0 }
   0x9   : > { %p37_p3 = scmp.ne.s32.totalorder %s512_s7, %s508_s6  ;;  %p38_p4 = scmp.eq.s32.totalorder %s561_s10, 0 }
   0xa   : > { %s577_s15 = scalar_select %p22_p1, %s516_s8, %s24_s13  }
   0xb   : > { %p579_p5 = por %p32_p2, %p31_p0  ;;  %p583_p6 = por %p38_p4, %p37_p3 }
   0xc   : > { %p61_p7 = scmp.eq.s32.totalorder %s561_s10, 1  ;;  %p67_p8 = scmp.eq.s32.totalorder %s359_s11, 1 }
   0xd   : > { %s723_s17 = scalar_select %p583_p6, 1, 0 }
   0xe   : > { %p388_p10 = scmp.lt.s32.totalorder %s520_s9, 2  ;;  %p590_p11 = por %p61_p7, %p31_p0 }
   0xf   : > { %p594_p12 = por %p67_p8, %p37_p3  ;;  %s87_s20 = sand.u32 1, %s516_s8  }
  0x10   : > { %s724_s18 = scalar_select %p590_p11, 1, 0 }
  0x11   : > { %s725_s19 = scalar_select %p594_p12, 1, 0 }
  0x12   : > { %s375_s21 = smul.u32 768, %s520_s9  ;;  %s362_s22 = sshll.u32 %s87_s20, 4 }
  0x13   : > { %s91_s26 = scalar_lea.vmem [#allocation2], %s362_s22  ;;  %p607_p13 = pnand %p388_p10, %p579_p5 }
  0x14   : > { %s603_s25 = scalar_lea.hbm %s718_s0, %s375_s21  ;;  %s99_s27 = sshll.u32 %s91_s26, 4  ;;  %s611_s27 = int_to_ptr.vmem [resolvable:$true] %s99_s27 }
  0x15   : > { %s614_s29 = scalar_lea.sflag [#allocation3], %s87_s20  ;;  %s428_s30 = scalar_lea.hbm %s603_s25, 256 }
  0x16   : > { %p429_p1 = scmp.ne.s32.totalorder %s603_s25, %s428_s30  ;;  %p430_p2 = pneg %p607_p13 }
  0x17   : > { %s433_s4 = scalar_lea.hbm %s718_s0, 1536  ;;  %p434_p5 = scmp.lt.s32.totalorder %s603_s25, %s718_s0 }
  0x18   : > { %p431_p3 = pnand %p430_p2, %p429_p1  ;;  %p435_p7 = scmp.lt.s32.totalorder %s433_s4, %s428_s30 }
  0x1a   : > { %p432_p4 = pneg %p431_p3  ;;  %p436_p8 = por %p435_p7, %p434_p5 }
  0x1c   : > { %p437_p10 = pnand %p436_p8, %p432_p4 }
  0x1e   : > { %440 = shalt.err (!%p437_p10)
}
  0x1f   : > { %s441_s13 = scalar_lea.vmem %s611_s27, 256  ;;  %s522_s14 = smov [#allocation2]  }
  0x20   : > { %p442_p9 = scmp.ne.s32.totalorder %s611_s27, %s441_s13  ;;  %s446_s16 = sshll.u32 %s522_s14, 4  ;;  %s447_s16 = int_to_ptr.vmem [resolvable:$false] %s446_s16 }
  0x21   : > { %s448_s20 = scalar_lea.vmem %s447_s16, 512  ;;  %p449_p3 = scmp.lt.s32.totalorder %s611_s27, %s447_s16 }
  0x22   : > { %p444_p0 = pnand %p442_p9, %p430_p2  ;;  %p450_p12 = scmp.lt.s32.totalorder %s448_s20, %s441_s13 }
  0x24   : > { %p445_p1 = pneg %p444_p0  ;;  %p451_p11 = por %p450_p12, %p449_p3 }
  0x26   : > { %p452_p6 = pnand %p451_p11, %p445_p1 }
  0x28   : > { %455 = shalt.err (!%p452_p6)
}
  0x29   : > { %s523_s21 = smov 48   ;;  %s524_s22 = smov 16  }
  0x2a   : > { %s525_s23 = smov 1   ;;  %p107_p9 = scmp.lt.s32.totalorder %s520_s9, 3 }
  0x2b   : > { %383 = dma.hbm_to_vmem [thread:$0]  (!%p607_p13), %s603_s25, 256, %s611_s27, %s614_s29, %s523_s21, %s524_s22, %s525_s23  }
  0x2c   : > { %p727_p0 = scmp.ge.s32.totalorder %s520_s9, 1 }
  0x2e   : > { %p108_p2 = pnand %p727_p0, %p107_p9 }
  0x2f   : > { %s639_s24 = sand.u32 (!%p108_p2), 1, %s512_s7   ;;  %p728_p6 = scmp.ne.s32.totalorder (!%p108_p2), %s723_s17, 0 }
  0x30   : > { %111 = sbr.rel (%p108_p2) target bundleno = 86 (0x56), region = 24  ;;  %s367_s26 = sshll.u32 (!%p108_p2), %s639_s24, 4 }
  0x31   : > { %s114_s30 = scalar_lea.sflag (!%p108_p2), [#allocation3], %s639_s24  ;;  %s645_s2 = scalar_lea.vmem (!%p108_p2), [#allocation2], %s367_s26 }
  0x35   : > { %499 = dma.done.wait (%p728_p6), %s114_s30, 256  }
  0x36   : > { %501 = vsyncadd (%p728_p6), %s114_s30, 4294967040  ;;  %v177_v0 = vlaneseq  ;;  %v526_v1 = vmov 1966171168   ;;  %v138_v6 = vld [vmem:[%s645_s2] sm:$0x1]  ;;  %s135_s17 = scalar_lea.vmem [#allocation5], %s367_s26 }
  0x37   : > { %v175_v2 = vunpack.c.l.s4 %v526_v1  ;;  %v139_v7 = vld [vmem:[%s645_s2 + $0x1] sm:$0x1]  ;;  %v140_v8 = vld [vmem:[%s645_s2 + $0x2] sm:$0x1]  ;;  %v141_v9 = vld [vmem:[%s645_s2 + $0x3] sm:$0x1] }
  0x38   : > { %v178_v3 = vshrl.u32 %v177_v0, 7  ;;  %v142_v10 = vld [vmem:[%s645_s2 + $0x4] sm:$0x1]  ;;  %v143_v11 = vld [vmem:[%s645_s2 + $0x5] sm:$0x1]  ;;  %v170_v12 = vcombine.low %v138_v6, %v139_v7  ;;  %v171_v15 = vcombine.low %v140_v8, %v141_v9  ;;  %s286_s25 = sshll.u32 %s135_s17, 4  ;;  %s670_s25 = int_to_ptr.vmem [resolvable:$true] %s286_s25 }
  0x39   : > { %v176_v4 = vunpack.c.0.s8 %v175_v2  ;;  %v144_v13 = vld [vmem:[%s645_s2 + $0x6] sm:$0x1]  ;;  %v145_v14 = vld [vmem:[%s645_s2 + $0x7] sm:$0x1]  ;;  %v172_v16 = vcombine.low %v142_v10, %v143_v11  ;;  %v146_v17 = vld [vmem:[%s645_s2 + $0x8] sm:$0x1] }
  0x3a   : > { %v173_v18 = vcombine.low %v144_v13, %v145_v14  ;;  %v147_v20 = vld [vmem:[%s645_s2 + $0x9] sm:$0x1]  ;;  %v148_v21 = vld [vmem:[%s645_s2 + $0xa] sm:$0x1]  ;;  %v149_v22 = vld [vmem:[%s645_s2 + $0xb] sm:$0x1] }
  0x3b   : > { %v179_v5 = vsub.s32 %v176_v4, %v178_v3  ;;  %v150_v25 = vld [vmem:[%s645_s2 + $0xc] sm:$0x1]  ;;  %v151_v26 = vld [vmem:[%s645_s2 + $0xd] sm:$0x1]  ;;  %v152_v27 = vld [vmem:[%s645_s2 + $0xe] sm:$0x1]  ;;  %v219_v28 = vcombine.low %v146_v17, %v147_v20  ;;  %v220_v29 = vcombine.low %v148_v21, %v149_v22 }
  0x3c   : > { %v153_v31 = vld [vmem:[%s645_s2 + $0xf] sm:$0x1]  ;;  %v221_v32 = vcombine.low %v150_v25, %v151_v26  ;;  %s374_s27 = sshll.u32 %s561_s10, 8  ;;  %s273_s4 = scalar_lea.sflag [#allocation4], %s639_s24 }
  0x3d   : > { %v180_v19 = vrot.slane %v170_v12, %v179_v5  ;;  %v187_v23 = vrot.slane %v171_v15, %v179_v5  ;;  %v194_v24 = vrot.slane %v172_v16, %v179_v5  ;;  %v201_v30 = vrot.slane %v173_v18, %v179_v5  ;;  %s675_s3 = scalar_lea.hbm %s719_s1, %s374_s27  ;;  %s456_s5 = scalar_lea.vmem %s670_s25, 256 }
  0x3e   : > { %v222_v34 = vcombine.low %v152_v27, %v153_v31  ;;  %v229_v35 = vrot.slane %v219_v28, %v179_v5  ;;  %v236_v36 = vrot.slane %v220_v29, %v179_v5  ;;  %v243_v38 = vrot.slane %v221_v32, %v179_v5  ;;  %p457_p11 = scmp.ne.s32.totalorder %s670_s25, %s456_s5  ;;  %p729_p12 = scmp.ne.s32.totalorder %s724_s18, 0 }
  0x3f   : > { %v202_v33 = vcombine.low %v180_v19, %v187_v23  ;;  %v203_v37 = vcombine.low %v194_v24, %v201_v30  ;;  %s527_s10 = smov [#allocation5]  }
  0x40   : > { %v250_v40 = vrot.slane %v222_v34, %v179_v5  ;;  %v251_v41 = vcombine.low %v229_v35, %v236_v36  ;;  %p458_p13 = pnand %p457_p11, %p729_p12  ;;  %s460_s11 = sshll.u32 %s527_s10, 4  ;;  %s461_s11 = int_to_ptr.vmem [resolvable:$false] %s460_s11 }
  0x41   : > { %v210_v39 = vrot.slane %v202_v33, %v179_v5  ;;  %v217_v42 = vrot.slane %v203_v37, %v179_v5  ;;  %s462_s13 = scalar_lea.vmem %s461_s11, 512  ;;  %p463_p5 = scmp.lt.s32.totalorder %s670_s25, %s461_s11 }
  0x42   : > { %v252_v43 = vcombine.low %v243_v38, %v250_v40  ;;  %v259_v44 = vrot.slane %v251_v41, %v179_v5  ;;  %p459_p4 = pneg %p458_p13  ;;  %p464_p7 = scmp.lt.s32.totalorder %s462_s13, %s456_s5 }
  0x43   : > { %v218_v45 = vcombine.low %v210_v39, %v217_v42 }
  0x44   : > { %v266_v46 = vrot.slane %v252_v43, %v179_v5  ;;  %p465_p8 = por %p464_p7, %p463_p5 }
  0x45   : > { %270 = vst [vmem:[%s135_s17] sm:$0xff] %v218_v45 }
  0x46   : > { %v267_v47 = vcombine.low %v259_v44, %v266_v46  ;;  %p466_p10 = pnand %p465_p8, %p459_p4 }
  0x48   : > { %271 = vst [vmem:[%s135_s17 + $0x8] sm:$0xff] %v267_v47 }
  0x49   : > { %469 = shalt.err (!%p466_p10)
}
  0x4a   : > { %s470_s14 = scalar_lea.hbm %s675_s3, 256  ;;  %s474_s21 = scalar_lea.hbm %s719_s1, 512 }
  0x4b   : > { %p471_p1 = scmp.ne.s32.totalorder %s675_s3, %s470_s14  ;;  %p475_p0 = scmp.lt.s32.totalorder %s675_s3, %s719_s1 }
  0x4c   : > { %p476_p2 = scmp.lt.s32.totalorder %s474_s21, %s470_s14 }
  0x4d   : > { %p472_p3 = pnand %p471_p1, %p729_p12 }
  0x4e   : > { %p477_p6 = por %p476_p2, %p475_p0 }
  0x4f   : > { %p473_p9 = pneg %p472_p3 }
  0x51   : > { %p478_p11 = pnand %p477_p6, %p473_p9 }
  0x53   : > { %481 = shalt.err (!%p478_p11)
}
  0x54   : > { %s528_s26 = smov 128   ;;  %s529_s30 = smov 8  }
  0x55   : > { %378 = dma.vmem_to_hbm [thread:$0]  (%p729_p12), %s670_s25, 256, %s675_s3, %s273_s4, %s528_s26, %s528_s26, %s529_s30  }
  0x56 PF: > { %s301_s2 = sand.u32 1, %s508_s6   ;;  %p730_p13 = scmp.ne.s32.totalorder %s725_s19, 0 }
  0x57   : > { %p731_p4 = scmp.ge.s32.totalorder %s520_s9, 2  ;;  %s302_s17 = scalar_lea.sflag [#allocation4], %s301_s2 }
  0x59   : > { %p385_p5 = pnand %p731_p4, %p730_p13 }
  0x5b   : > { %p386_p7 = pneg %p385_p5 }
  0x5d   : > { %503 = dma.done.wait (%p386_p7), %s302_s17, 256  }
  0x5e   : > { %505 = vsyncadd (%p386_p7), %s302_s17, 4294967040  ;;  %p14_p8 = scmp.ge.s32.totalorder %s565_s12, 4   ;;  %s732_s6 = smov %s512_s7 }
  0x5f   : > { %s733_s7 = smov %s516_s8  ;;  %s734_s8 = smov %s577_s15 }
  0x60   : > { %s735_s9 = smov %s565_s12  ;;  %16 = sbr.rel (!%p14_p8) target bundleno = 5 (0x5), region = 69 }
  0x65   :  { %307 = vsyncpa [#allocation3], 1 }
  0x66   :  { %309 = vsyncpa [#allocation3 + $0x1], 1 }
  0x67   :  { %310 = vsyncpa [#allocation4], 1 }
  0x68   :  { %312 = vsyncpa [#allocation4 + $0x1], 1 }

</bundles_post_ra>
